<compile_context>
chip_gen: v7x
topology: tpu7x:2x2x1
jax: 0.10.0
libtpu: 0.0.40
codegen_flags: <defaults>
</compile_context>

<pallas_src>
import functools

import jax
import jax.numpy as jnp
import numpy as np
from jax import lax
from jax.experimental import pallas as pl
from jax.experimental.pallas import tpu as pltpu


def _qkv_kernel(x_ref, w_qkv_ref, q_ref, k_ref, v_ref):
    """Fused Q/K/V projection: one (W, E) x (E, 3E) MXU matmul per batch."""
    E = q_ref.shape[-1]
    x = x_ref[0]                                                   # (W, E)
    qkv = jnp.dot(x, w_qkv_ref[...], preferred_element_type=jnp.float32)  # (W, 3E)
    # E is a multiple of 128 in the test, so these lane slices are tile-aligned.
    q_ref[0] = qkv[:, 0 * E:1 * E]
    k_ref[0] = qkv[:, 1 * E:2 * E]
    v_ref[0] = qkv[:, 2 * E:3 * E]


def _attn_out_kernel(q_ref, k_ref, v_ref, wo_ref, bo_ref, o_ref, *, scale):
    """Per-batch attention over all heads + head-concat + output projection.

    q/k/v refs: (1, H, W, D). Heads are looped statically inside the kernel
    (no grid axis over heads). The reference's transpose(1,2).reshape(B,W,E)
    followed by w_o is fused by accumulating o_h @ Wo^T[h*D:(h+1)*D, :] into a
    lane-dense (W, E) tile, so no narrow (W, D) blocks ever hit HBM.

    TODO(synk): for large W, replace the materialized (W, W) score matrix with
    a flash-style online-softmax loop over KV tiles; for production also cast
    matmul inputs to bf16 (keep f32 accumulation / softmax math).
    """
    _, H, W, D = q_ref.shape
    E = o_ref.shape[-1]

    acc = jnp.zeros((W, E), dtype=jnp.float32)
    for h in range(H):                       # static unrolled loop, H is small
        qh = q_ref[0, h]                     # (W, D)
        kh = k_ref[0, h]                     # (W, D)
        vh = v_ref[0, h]                     # (W, D)
        # q @ k^T via dot_general contracting the last dims (no explicit k.T).
        dots = lax.dot_general(
            qh, kh, (((1,), (1,)), ((), ())),
            preferred_element_type=jnp.float32) * scale            # (W, W)
        m = jnp.max(dots, axis=-1, keepdims=True)
        p = jnp.exp(dots - m)
        l = jnp.sum(p, axis=-1, keepdims=True)
        # approx=True would push this onto the EUP lookup path; kept exact so
        # the f32 result stays tight against the reference.
        attn = p * pl.reciprocal(l, approx=False)
        oh = jnp.dot(attn, vh, preferred_element_type=jnp.float32)  # (W, D)
        # Fused head-concat + output projection (sublane slice of Wo^T is
        # aligned: h*D is a multiple of 8).
        acc = acc + jnp.dot(oh, wo_ref[h * D:(h + 1) * D, :],
                            preferred_element_type=jnp.float32)
    o_ref[0] = acc + bo_ref[...]             # bias broadcast over W


def multi_head_self_attention(x, wq, wk, wv, wo, bo, nb_head):
    """x: (B, W, E); w*: (E, E) in PyTorch (out, in) layout; bo: (E,)."""
    B, W, E = x.shape
    H = nb_head if E % nb_head == 0 else 1
    D = E // H
    scale = 1.0 / (D ** 0.5)

    # Fused QKV weight, (in, out) layout: (E, 3E).
    w_qkv = jnp.concatenate([wq.T, wk.T, wv.T], axis=1)

    # ---- kernel A: fused Q/K/V projection ----
    q, k, v = pl.pallas_call(
        _qkv_kernel,
        out_shape=[jax.ShapeDtypeStruct((B, W, E), jnp.float32)] * 3,
        grid=(B,),
        in_specs=[
            pl.BlockSpec((1, W, E), lambda b: (b, 0, 0)),
            pl.BlockSpec((E, 3 * E), lambda b: (0, 0)),
        ],
        out_specs=[pl.BlockSpec((1, W, E), lambda b: (b, 0, 0))] * 3,
        compiler_params=pltpu.CompilerParams(dimension_semantics=("parallel",)),
    )(x, w_qkv)

    # torch `.view(B, H, W, D)` on the contiguous (B, W, E) projection is a
    # row-major reinterpretation -> zero-copy bitcast reshape in XLA.
    q = q.reshape(B, H, W, D)
    k = k.reshape(B, H, W, D)
    v = v.reshape(B, H, W, D)

    # ---- kernel B: attention + head-concat + output projection ----
    # TODO(synk): nn.Dropout inside w_o is identity at inference; not applied.
    out = pl.pallas_call(
        functools.partial(_attn_out_kernel, scale=scale),
        out_shape=jax.ShapeDtypeStruct((B, W, E), jnp.float32),
        grid=(B,),
        in_specs=[
            pl.BlockSpec((1, H, W, D), lambda b: (b, 0, 0, 0)),
            pl.BlockSpec((1, H, W, D), lambda b: (b, 0, 0, 0)),
            pl.BlockSpec((1, H, W, D), lambda b: (b, 0, 0, 0)),
            pl.BlockSpec((E, E), lambda b: (0, 0)),
            pl.BlockSpec((1, E), lambda b: (0, 0)),
        ],
        out_specs=pl.BlockSpec((1, W, E), lambda b: (b, 0, 0)),
        compiler_params=pltpu.CompilerParams(dimension_semantics=("parallel",)),
    )(q, k, v, wo.T, bo.reshape(1, E))

    return out[:, None, :, :]  # unsqueeze(1) -> (B, 1, W, E)


def _reference(x, wq, wk, wv, wo, bo, nb_head):
    B, W, E = x.shape
    H = nb_head if E % nb_head == 0 else 1
    D = E // H
    q = (x @ wq.T).reshape(B, H, W, D)
    k = (x @ wk.T).reshape(B, H, W, D)
    v = (x @ wv.T).reshape(B, H, W, D)
    dots = jnp.einsum("bhqd,bhkd->bhqk", q, k) / (D ** 0.5)
    attn = jax.nn.softmax(dots, axis=-1)
    o = jnp.einsum("bhqk,bhkd->bhqd", attn, v)
    o = jnp.transpose(o, (0, 2, 1, 3)).reshape(B, W, E)
    o = o @ wo.T + bo
    return o[:, None]


if __name__ == "__main__":
    # batch, window_len, embed_dim, nb_head  (E multiple of 128 -> lane-aligned)
    B, W, E, H = 2, 8, 128, 4

    key = jax.random.PRNGKey(0)
    k1, k2, k3, k4, k5, k6 = jax.random.split(key, 6)
    init_scale = 1.0 / (E ** 0.5)
    x = jax.random.normal(k1, (B, W, E), dtype=jnp.float32)
    wq = jax.random.normal(k2, (E, E), jnp.float32) * init_scale  # (out, in)
    wk = jax.random.normal(k3, (E, E), jnp.float32) * init_scale
    wv = jax.random.normal(k4, (E, E), jnp.float32) * init_scale
    wo = jax.random.normal(k5, (E, E), jnp.float32) * init_scale
    bo = jax.random.normal(k6, (E,), jnp.float32) * init_scale

    fn = jax.jit(functools.partial(multi_head_self_attention, nb_head=H))
    out = jax.block_until_ready(fn(x, wq, wk, wv, wo, bo))

    assert out.shape == (B, 1, W, E), out.shape
    ref = _reference(x, wq, wk, wv, wo, bo, nb_head=H)
    # Tolerance slightly looser than 1e-5: the fused per-head output projection
    # accumulates in a different (but f32) order than the reference matmul.
    np.testing.assert_allclose(np.asarray(out), np.asarray(ref),
                               rtol=1e-4, atol=1e-4)

    print("KERNEL_OK")
</pallas_src>

<mosaic_0001>
module attributes {stable_mosaic.version = 11 : i64} {
  func.func @_qkv_kernel(%arg0: i32, %arg1: memref<1x8x128xf32, #tpu.memory_space<vmem>>, %arg2: memref<128x384xf32, #tpu.memory_space<vmem>>, %arg3: memref<1x8x128xf32, #tpu.memory_space<vmem>>, %arg4: memref<1x8x128xf32, #tpu.memory_space<vmem>>, %arg5: memref<1x8x128xf32, #tpu.memory_space<vmem>>) attributes {dimension_semantics = [#tpu.dimension_semantics<parallel>], iteration_bounds = array<i64: 2>, scalar_prefetch = 0 : i64, scratch_operands = 0 : i64, tpu.core_type = #tpu.core_type<tc>, window_params = [{transform_indices = @transform_0, window_bounds = array<i64: 1, 8, 128>}, {pipeline_mode = #tpu.pipeline_mode<synchronous>, transform_indices = @transform_1, window_bounds = array<i64: 128, 384>}, {transform_indices = @transform_2, window_bounds = array<i64: 1, 8, 128>}, {transform_indices = @transform_3, window_bounds = array<i64: 1, 8, 128>}, {transform_indices = @transform_4, window_bounds = array<i64: 1, 8, 128>}]} {
    %c0 = arith.constant 0 : index
    %c0_0 = arith.constant 0 : index
    %c0_1 = arith.constant 0 : index
    %0 = vector.load %arg1[%c0, %c0_0, %c0_1] : memref<1x8x128xf32, #tpu.memory_space<vmem>>, vector<1x8x128xf32>
    %1 = vector.shape_cast %0 : vector<1x8x128xf32> to vector<8x128xf32>
    %c0_2 = arith.constant 0 : index
    %c0_3 = arith.constant 0 : index
    %2 = vector.load %arg2[%c0_2, %c0_3] : memref<128x384xf32, #tpu.memory_space<vmem>>, vector<128x384xf32>
    %cst = arith.constant dense<0.000000e+00> : vector<8x384xf32>
    %3 = tpu.matmul %1, %2, %cst {dimension_numbers = #tpu.dot_dimension_numbers<[1], [0], [0], [1], [0, 0, 1, 1], [], []>} : vector<8x128xf32>, vector<128x384xf32>, vector<8x384xf32> -> vector<8x384xf32>
    %4 = vector.extract_strided_slice %3 {offsets = [0, 0], sizes = [8, 128], strides = [1, 1]} : vector<8x384xf32> to vector<8x128xf32>
    %c0_4 = arith.constant 0 : index
    %c0_5 = arith.constant 0 : index
    %c0_6 = arith.constant 0 : index
    %5 = vector.load %arg3[%c0_4, %c0_5, %c0_6] : memref<1x8x128xf32, #tpu.memory_space<vmem>>, vector<1x8x128xf32>
    %6 = vector.shape_cast %5 : vector<1x8x128xf32> to vector<8x128xf32>
    %7 = vector.shape_cast %4 : vector<8x128xf32> to vector<1x8x128xf32>
    tpu.vector_store %arg3[%c0_4, %c0_5, %c0_6], %7 {strides = array<i32>} : memref<1x8x128xf32, #tpu.memory_space<vmem>>, vector<1x8x128xf32>,
    %8 = vector.extract_strided_slice %3 {offsets = [0, 128], sizes = [8, 128], strides = [1, 1]} : vector<8x384xf32> to vector<8x128xf32>
    %c0_7 = arith.constant 0 : index
    %c0_8 = arith.constant 0 : index
    %c0_9 = arith.constant 0 : index
    %9 = vector.load %arg4[%c0_7, %c0_8, %c0_9] : memref<1x8x128xf32, #tpu.memory_space<vmem>>, vector<1x8x128xf32>
    %10 = vector.shape_cast %9 : vector<1x8x128xf32> to vector<8x128xf32>
    %11 = vector.shape_cast %8 : vector<8x128xf32> to vector<1x8x128xf32>
    tpu.vector_store %arg4[%c0_7, %c0_8, %c0_9], %11 {strides = array<i32>} : memref<1x8x128xf32, #tpu.memory_space<vmem>>, vector<1x8x128xf32>,
    %12 = vector.extract_strided_slice %3 {offsets = [0, 256], sizes = [8, 128], strides = [1, 1]} : vector<8x384xf32> to vector<8x128xf32>
    %c0_10 = arith.constant 0 : index
    %c0_11 = arith.constant 0 : index
    %c0_12 = arith.constant 0 : index
    %13 = vector.load %arg5[%c0_10, %c0_11, %c0_12] : memref<1x8x128xf32, #tpu.memory_space<vmem>>, vector<1x8x128xf32>
    %14 = vector.shape_cast %13 : vector<1x8x128xf32> to vector<8x128xf32>
    %15 = vector.shape_cast %12 : vector<8x128xf32> to vector<1x8x128xf32>
    tpu.vector_store %arg5[%c0_10, %c0_11, %c0_12], %15 {strides = array<i32>} : memref<1x8x128xf32, #tpu.memory_space<vmem>>, vector<1x8x128xf32>,
    return
  }
  func.func @transform_0(%arg0: i32) -> (i32, i32, i32) {
    %c0_i32 = arith.constant 0 : i32
    %c0_i32_0 = arith.constant 0 : i32
    %c0_i32_1 = arith.constant 0 : i32
    return %arg0, %c0_i32, %c0_i32_0 : i32, i32, i32
  }
  func.func @transform_1(%arg0: i32) -> (i32, i32) {
    %c0_i32 = arith.constant 0 : i32
    %c0_i32_0 = arith.constant 0 : i32
    %c0_i32_1 = arith.constant 0 : i32
    return %c0_i32, %c0_i32_0 : i32, i32
  }
  func.func @transform_2(%arg0: i32) -> (i32, i32, i32) {
    %c0_i32 = arith.constant 0 : i32
    %c0_i32_0 = arith.constant 0 : i32
    %c0_i32_1 = arith.constant 0 : i32
    return %arg0, %c0_i32, %c0_i32_0 : i32, i32, i32
  }
  func.func @transform_3(%arg0: i32) -> (i32, i32, i32) {
    %c0_i32 = arith.constant 0 : i32
    %c0_i32_0 = arith.constant 0 : i32
    %c0_i32_1 = arith.constant 0 : i32
    return %arg0, %c0_i32, %c0_i32_0 : i32, i32, i32
  }
  func.func @transform_4(%arg0: i32) -> (i32, i32, i32) {
    %c0_i32 = arith.constant 0 : i32
    %c0_i32_0 = arith.constant 0 : i32
    %c0_i32_1 = arith.constant 0 : i32
    return %arg0, %c0_i32, %c0_i32_0 : i32, i32, i32
  }
}

module attributes {stable_mosaic.version = 11 : i64} {
  func.func @_attn_out_kernel(%arg0: i32, %arg1: memref<1x4x8x32xf32, #tpu.memory_space<vmem>>, %arg2: memref<1x4x8x32xf32, #tpu.memory_space<vmem>>, %arg3: memref<1x4x8x32xf32, #tpu.memory_space<vmem>>, %arg4: memref<128x128xf32, #tpu.memory_space<vmem>>, %arg5: memref<1x128xf32, #tpu.memory_space<vmem>>, %arg6: memref<1x8x128xf32, #tpu.memory_space<vmem>>) attributes {dimension_semantics = [#tpu.dimension_semantics<parallel>], iteration_bounds = array<i64: 2>, scalar_prefetch = 0 : i64, scratch_operands = 0 : i64, tpu.core_type = #tpu.core_type<tc>, window_params = [{transform_indices = @transform_0, window_bounds = array<i64: 1, 4, 8, 32>}, {transform_indices = @transform_1, window_bounds = array<i64: 1, 4, 8, 32>}, {transform_indices = @transform_2, window_bounds = array<i64: 1, 4, 8, 32>}, {pipeline_mode = #tpu.pipeline_mode<synchronous>, transform_indices = @transform_3, window_bounds = array<i64: 128, 128>}, {pipeline_mode = #tpu.pipeline_mode<synchronous>, transform_indices = @transform_4, window_bounds = array<i64: 1, 128>}, {transform_indices = @transform_5, window_bounds = array<i64: 1, 8, 128>}]} {
    %cst = arith.constant 0.000000e+00 : f32
    %0 = vector.broadcast %cst : f32 to vector<8x128xf32>
    %c0 = arith.constant 0 : index
    %c0_0 = arith.constant 0 : index
    %c0_1 = arith.constant 0 : index
    %c0_2 = arith.constant 0 : index
    %1 = vector.load %arg1[%c0, %c0_0, %c0_1, %c0_2] : memref<1x4x8x32xf32, #tpu.memory_space<vmem>>, vector<1x1x8x32xf32>
    %2 = vector.shape_cast %1 : vector<1x1x8x32xf32> to vector<8x32xf32>
    %c0_3 = arith.constant 0 : index
    %c0_4 = arith.constant 0 : index
    %c0_5 = arith.constant 0 : index
    %c0_6 = arith.constant 0 : index
    %3 = vector.load %arg2[%c0_3, %c0_4, %c0_5, %c0_6] : memref<1x4x8x32xf32, #tpu.memory_space<vmem>>, vector<1x1x8x32xf32>
    %4 = vector.shape_cast %3 : vector<1x1x8x32xf32> to vector<8x32xf32>
    %c0_7 = arith.constant 0 : index
    %c0_8 = arith.constant 0 : index
    %c0_9 = arith.constant 0 : index
    %c0_10 = arith.constant 0 : index
    %5 = vector.load %arg3[%c0_7, %c0_8, %c0_9, %c0_10] : memref<1x4x8x32xf32, #tpu.memory_space<vmem>>, vector<1x1x8x32xf32>
    %6 = vector.shape_cast %5 : vector<1x1x8x32xf32> to vector<8x32xf32>
    %cst_11 = arith.constant dense<0.000000e+00> : vector<8x8xf32>
    %7 = tpu.matmul %2, %4, %cst_11 {dimension_numbers = #tpu.dot_dimension_numbers<[1], [1], [0], [0], [0, 0, 1, 0], [], []>} : vector<8x32xf32>, vector<8x32xf32>, vector<8x8xf32> -> vector<8x8xf32>
    %cst_12 = arith.constant 0.176776692 : f32
    %8 = vector.broadcast %cst_12 : f32 to vector<8x8xf32>
    %9 = arith.mulf %7, %8 : vector<8x8xf32>
    %cst_13 = arith.constant dense<0xFF800000> : vector<8xf32>
    %10 = vector.multi_reduction <maximumf>, %9, %cst_13 [1] : vector<8x8xf32> to vector<8xf32>
    %11 = vector.shape_cast %10 : vector<8xf32> to vector<8x1xf32>
    %12 = vector.broadcast %11 : vector<8x1xf32> to vector<8x8xf32>
    %13 = arith.subf %9, %12 : vector<8x8xf32>
    %14 = math.exp %13 : vector<8x8xf32>
    %cst_14 = arith.constant dense<0.000000e+00> : vector<8xf32>
    %15 = vector.multi_reduction <add>, %14, %cst_14 [1] : vector<8x8xf32> to vector<8xf32>
    %16 = vector.shape_cast %15 : vector<8xf32> to vector<8x1xf32>
    %17 = tpu.reciprocal %16 : vector<8x1xf32> -> vector<8x1xf32>
    %18 = vector.broadcast %17 : vector<8x1xf32> to vector<8x8xf32>
    %19 = arith.mulf %14, %18 : vector<8x8xf32>
    %cst_15 = arith.constant dense<0.000000e+00> : vector<8x32xf32>
    %20 = tpu.matmul %19, %6, %cst_15 {dimension_numbers = #tpu.dot_dimension_numbers<[1], [0], [0], [1], [0, 0, 1, 1], [], []>} : vector<8x8xf32>, vector<8x32xf32>, vector<8x32xf32> -> vector<8x32xf32>
    %c0_16 = arith.constant 0 : index
    %c0_17 = arith.constant 0 : index
    %21 = vector.load %arg4[%c0_16, %c0_17] : memref<128x128xf32, #tpu.memory_space<vmem>>, vector<32x128xf32>
    %cst_18 = arith.constant dense<0.000000e+00> : vector<8x128xf32>
    %22 = tpu.matmul %20, %21, %cst_18 {dimension_numbers = #tpu.dot_dimension_numbers<[1], [0], [0], [1], [0, 0, 1, 1], [], []>} : vector<8x32xf32>, vector<32x128xf32>, vector<8x128xf32> -> vector<8x128xf32>
    %23 = arith.addf %0, %22 : vector<8x128xf32>
    %c0_19 = arith.constant 0 : index
    %c1 = arith.constant 1 : index
    %c0_20 = arith.constant 0 : index
    %c0_21 = arith.constant 0 : index
    %24 = vector.load %arg1[%c0_19, %c1, %c0_20, %c0_21] : memref<1x4x8x32xf32, #tpu.memory_space<vmem>>, vector<1x1x8x32xf32>
    %25 = vector.shape_cast %24 : vector<1x1x8x32xf32> to vector<8x32xf32>
    %c0_22 = arith.constant 0 : index
    %c1_23 = arith.constant 1 : index
    %c0_24 = arith.constant 0 : index
    %c0_25 = arith.constant 0 : index
    %26 = vector.load %arg2[%c0_22, %c1_23, %c0_24, %c0_25] : memref<1x4x8x32xf32, #tpu.memory_space<vmem>>, vector<1x1x8x32xf32>
    %27 = vector.shape_cast %26 : vector<1x1x8x32xf32> to vector<8x32xf32>
    %c0_26 = arith.constant 0 : index
    %c1_27 = arith.constant 1 : index
    %c0_28 = arith.constant 0 : index
    %c0_29 = arith.constant 0 : index
    %28 = vector.load %arg3[%c0_26, %c1_27, %c0_28, %c0_29] : memref<1x4x8x32xf32, #tpu.memory_space<vmem>>, vector<1x1x8x32xf32>
    %29 = vector.shape_cast %28 : vector<1x1x8x32xf32> to vector<8x32xf32>
    %cst_30 = arith.constant dense<0.000000e+00> : vector<8x8xf32>
    %30 = tpu.matmul %25, %27, %cst_30 {dimension_numbers = #tpu.dot_dimension_numbers<[1], [1], [0], [0], [0, 0, 1, 0], [], []>} : vector<8x32xf32>, vector<8x32xf32>, vector<8x8xf32> -> vector<8x8xf32>
    %cst_31 = arith.constant 0.176776692 : f32
    %31 = vector.broadcast %cst_31 : f32 to vector<8x8xf32>
    %32 = arith.mulf %30, %31 : vector<8x8xf32>
    %cst_32 = arith.constant dense<0xFF800000> : vector<8xf32>
    %33 = vector.multi_reduction <maximumf>, %32, %cst_32 [1] : vector<8x8xf32> to vector<8xf32>
    %34 = vector.shape_cast %33 : vector<8xf32> to vector<8x1xf32>
    %35 = vector.broadcast %34 : vector<8x1xf32> to vector<8x8xf32>
    %36 = arith.subf %32, %35 : vector<8x8xf32>
    %37 = math.exp %36 : vector<8x8xf32>
    %cst_33 = arith.constant dense<0.000000e+00> : vector<8xf32>
    %38 = vector.multi_reduction <add>, %37, %cst_33 [1] : vector<8x8xf32> to vector<8xf32>
    %39 = vector.shape_cast %38 : vector<8xf32> to vector<8x1xf32>
    %40 = tpu.reciprocal %39 : vector<8x1xf32> -> vector<8x1xf32>
    %41 = vector.broadcast %40 : vector<8x1xf32> to vector<8x8xf32>
    %42 = arith.mulf %37, %41 : vector<8x8xf32>
    %cst_34 = arith.constant dense<0.000000e+00> : vector<8x32xf32>
    %43 = tpu.matmul %42, %29, %cst_34 {dimension_numbers = #tpu.dot_dimension_numbers<[1], [0], [0], [1], [0, 0, 1, 1], [], []>} : vector<8x8xf32>, vector<8x32xf32>, vector<8x32xf32> -> vector<8x32xf32>
    %c32 = arith.constant 32 : index
    %c0_35 = arith.constant 0 : index
    %44 = vector.load %arg4[%c32, %c0_35] : memref<128x128xf32, #tpu.memory_space<vmem>>, vector<32x128xf32>
    %cst_36 = arith.constant dense<0.000000e+00> : vector<8x128xf32>
    %45 = tpu.matmul %43, %44, %cst_36 {dimension_numbers = #tpu.dot_dimension_numbers<[1], [0], [0], [1], [0, 0, 1, 1], [], []>} : vector<8x32xf32>, vector<32x128xf32>, vector<8x128xf32> -> vector<8x128xf32>
    %46 = arith.addf %23, %45 : vector<8x128xf32>
    %c0_37 = arith.constant 0 : index
    %c2 = arith.constant 2 : index
    %c0_38 = arith.constant 0 : index
    %c0_39 = arith.constant 0 : index
    %47 = vector.load %arg1[%c0_37, %c2, %c0_38, %c0_39] : memref<1x4x8x32xf32, #tpu.memory_space<vmem>>, vector<1x1x8x32xf32>
    %48 = vector.shape_cast %47 : vector<1x1x8x32xf32> to vector<8x32xf32>
    %c0_40 = arith.constant 0 : index
    %c2_41 = arith.constant 2 : index
    %c0_42 = arith.constant 0 : index
    %c0_43 = arith.constant 0 : index
    %49 = vector.load %arg2[%c0_40, %c2_41, %c0_42, %c0_43] : memref<1x4x8x32xf32, #tpu.memory_space<vmem>>, vector<1x1x8x32xf32>
    %50 = vector.shape_cast %49 : vector<1x1x8x32xf32> to vector<8x32xf32>
    %c0_44 = arith.constant 0 : index
    %c2_45 = arith.constant 2 : index
    %c0_46 = arith.constant 0 : index
    %c0_47 = arith.constant 0 : index
    %51 = vector.load %arg3[%c0_44, %c2_45, %c0_46, %c0_47] : memref<1x4x8x32xf32, #tpu.memory_space<vmem>>, vector<1x1x8x32xf32>
    %52 = vector.shape_cast %51 : vector<1x1x8x32xf32> to vector<8x32xf32>
    %cst_48 = arith.constant dense<0.000000e+00> : vector<8x8xf32>
    %53 = tpu.matmul %48, %50, %cst_48 {dimension_numbers = #tpu.dot_dimension_numbers<[1], [1], [0], [0], [0, 0, 1, 0], [], []>} : vector<8x32xf32>, vector<8x32xf32>, vector<8x8xf32> -> vector<8x8xf32>
    %cst_49 = arith.constant 0.176776692 : f32
    %54 = vector.broadcast %cst_49 : f32 to vector<8x8xf32>
    %55 = arith.mulf %53, %54 : vector<8x8xf32>
    %cst_50 = arith.constant dense<0xFF800000> : vector<8xf32>
    %56 = vector.multi_reduction <maximumf>, %55, %cst_50 [1] : vector<8x8xf32> to vector<8xf32>
    %57 = vector.shape_cast %56 : vector<8xf32> to vector<8x1xf32>
    %58 = vector.broadcast %57 : vector<8x1xf32> to vector<8x8xf32>
    %59 = arith.subf %55, %58 : vector<8x8xf32>
    %60 = math.exp %59 : vector<8x8xf32>
    %cst_51 = arith.constant dense<0.000000e+00> : vector<8xf32>
    %61 = vector.multi_reduction <add>, %60, %cst_51 [1] : vector<8x8xf32> to vector<8xf32>
    %62 = vector.shape_cast %61 : vector<8xf32> to vector<8x1xf32>
    %63 = tpu.reciprocal %62 : vector<8x1xf32> -> vector<8x1xf32>
    %64 = vector.broadcast %63 : vector<8x1xf32> to vector<8x8xf32>
    %65 = arith.mulf %60, %64 : vector<8x8xf32>
    %cst_52 = arith.constant dense<0.000000e+00> : vector<8x32xf32>
    %66 = tpu.matmul %65, %52, %cst_52 {dimension_numbers = #tpu.dot_dimension_numbers<[1], [0], [0], [1], [0, 0, 1, 1], [], []>} : vector<8x8xf32>, vector<8x32xf32>, vector<8x32xf32> -> vector<8x32xf32>
    %c64 = arith.constant 64 : index
    %c0_53 = arith.constant 0 : index
    %67 = vector.load %arg4[%c64, %c0_53] : memref<128x128xf32, #tpu.memory_space<vmem>>, vector<32x128xf32>
    %cst_54 = arith.constant dense<0.000000e+00> : vector<8x128xf32>
    %68 = tpu.matmul %66, %67, %cst_54 {dimension_numbers = #tpu.dot_dimension_numbers<[1], [0], [0], [1], [0, 0, 1, 1], [], []>} : vector<8x32xf32>, vector<32x128xf32>, vector<8x128xf32> -> vector<8x128xf32>
    %69 = arith.addf %46, %68 : vector<8x128xf32>
    %c0_55 = arith.constant 0 : index
    %c3 = arith.constant 3 : index
    %c0_56 = arith.constant 0 : index
    %c0_57 = arith.constant 0 : index
    %70 = vector.load %arg1[%c0_55, %c3, %c0_56, %c0_57] : memref<1x4x8x32xf32, #tpu.memory_space<vmem>>, vector<1x1x8x32xf32>
    %71 = vector.shape_cast %70 : vector<1x1x8x32xf32> to vector<8x32xf32>
    %c0_58 = arith.constant 0 : index
    %c3_59 = arith.constant 3 : index
    %c0_60 = arith.constant 0 : index
    %c0_61 = arith.constant 0 : index
    %72 = vector.load %arg2[%c0_58, %c3_59, %c0_60, %c0_61] : memref<1x4x8x32xf32, #tpu.memory_space<vmem>>, vector<1x1x8x32xf32>
    %73 = vector.shape_cast %72 : vector<1x1x8x32xf32> to vector<8x32xf32>
    %c0_62 = arith.constant 0 : index
    %c3_63 = arith.constant 3 : index
    %c0_64 = arith.constant 0 : index
    %c0_65 = arith.constant 0 : index
    %74 = vector.load %arg3[%c0_62, %c3_63, %c0_64, %c0_65] : memref<1x4x8x32xf32, #tpu.memory_space<vmem>>, vector<1x1x8x32xf32>
    %75 = vector.shape_cast %74 : vector<1x1x8x32xf32> to vector<8x32xf32>
    %cst_66 = arith.constant dense<0.000000e+00> : vector<8x8xf32>
    %76 = tpu.matmul %71, %73, %cst_66 {dimension_numbers = #tpu.dot_dimension_numbers<[1], [1], [0], [0], [0, 0, 1, 0], [], []>} : vector<8x32xf32>, vector<8x32xf32>, vector<8x8xf32> -> vector<8x8xf32>
    %cst_67 = arith.constant 0.176776692 : f32
    %77 = vector.broadcast %cst_67 : f32 to vector<8x8xf32>
    %78 = arith.mulf %76, %77 : vector<8x8xf32>
    %cst_68 = arith.constant dense<0xFF800000> : vector<8xf32>
    %79 = vector.multi_reduction <maximumf>, %78, %cst_68 [1] : vector<8x8xf32> to vector<8xf32>
    %80 = vector.shape_cast %79 : vector<8xf32> to vector<8x1xf32>
    %81 = vector.broadcast %80 : vector<8x1xf32> to vector<8x8xf32>
    %82 = arith.subf %78, %81 : vector<8x8xf32>
    %83 = math.exp %82 : vector<8x8xf32>
    %cst_69 = arith.constant dense<0.000000e+00> : vector<8xf32>
    %84 = vector.multi_reduction <add>, %83, %cst_69 [1] : vector<8x8xf32> to vector<8xf32>
    %85 = vector.shape_cast %84 : vector<8xf32> to vector<8x1xf32>
    %86 = tpu.reciprocal %85 : vector<8x1xf32> -> vector<8x1xf32>
    %87 = vector.broadcast %86 : vector<8x1xf32> to vector<8x8xf32>
    %88 = arith.mulf %83, %87 : vector<8x8xf32>
    %cst_70 = arith.constant dense<0.000000e+00> : vector<8x32xf32>
    %89 = tpu.matmul %88, %75, %cst_70 {dimension_numbers = #tpu.dot_dimension_numbers<[1], [0], [0], [1], [0, 0, 1, 1], [], []>} : vector<8x8xf32>, vector<8x32xf32>, vector<8x32xf32> -> vector<8x32xf32>
    %c96 = arith.constant 96 : index
    %c0_71 = arith.constant 0 : index
    %90 = vector.load %arg4[%c96, %c0_71] : memref<128x128xf32, #tpu.memory_space<vmem>>, vector<32x128xf32>
    %cst_72 = arith.constant dense<0.000000e+00> : vector<8x128xf32>
    %91 = tpu.matmul %89, %90, %cst_72 {dimension_numbers = #tpu.dot_dimension_numbers<[1], [0], [0], [1], [0, 0, 1, 1], [], []>} : vector<8x32xf32>, vector<32x128xf32>, vector<8x128xf32> -> vector<8x128xf32>
    %92 = arith.addf %69, %91 : vector<8x128xf32>
    %c0_73 = arith.constant 0 : index
    %c0_74 = arith.constant 0 : index
    %93 = vector.load %arg5[%c0_73, %c0_74] : memref<1x128xf32, #tpu.memory_space<vmem>>, vector<1x128xf32>
    %94 = vector.broadcast %93 : vector<1x128xf32> to vector<8x128xf32>
    %95 = arith.addf %92, %94 : vector<8x128xf32>
    %c0_75 = arith.constant 0 : index
    %c0_76 = arith.constant 0 : index
    %c0_77 = arith.constant 0 : index
    %96 = vector.load %arg6[%c0_75, %c0_76, %c0_77] : memref<1x8x128xf32, #tpu.memory_space<vmem>>, vector<1x8x128xf32>
    %97 = vector.shape_cast %96 : vector<1x8x128xf32> to vector<8x128xf32>
    %98 = vector.shape_cast %95 : vector<8x128xf32> to vector<1x8x128xf32>
    tpu.vector_store %arg6[%c0_75, %c0_76, %c0_77], %98 {strides = array<i32>} : memref<1x8x128xf32, #tpu.memory_space<vmem>>, vector<1x8x128xf32>,
    return
  }
  func.func @transform_0(%arg0: i32) -> (i32, i32, i32, i32) {
    %c0_i32 = arith.constant 0 : i32
    %c0_i32_0 = arith.constant 0 : i32
    %c0_i32_1 = arith.constant 0 : i32
    %c0_i32_2 = arith.constant 0 : i32
    return %arg0, %c0_i32, %c0_i32_0, %c0_i32_1 : i32, i32, i32, i32
  }
  func.func @transform_1(%arg0: i32) -> (i32, i32, i32, i32) {
    %c0_i32 = arith.constant 0 : i32
    %c0_i32_0 = arith.constant 0 : i32
    %c0_i32_1 = arith.constant 0 : i32
    %c0_i32_2 = arith.constant 0 : i32
    return %arg0, %c0_i32, %c0_i32_0, %c0_i32_1 : i32, i32, i32, i32
  }
  func.func @transform_2(%arg0: i32) -> (i32, i32, i32, i32) {
    %c0_i32 = arith.constant 0 : i32
    %c0_i32_0 = arith.constant 0 : i32
    %c0_i32_1 = arith.constant 0 : i32
    %c0_i32_2 = arith.constant 0 : i32
    return %arg0, %c0_i32, %c0_i32_0, %c0_i32_1 : i32, i32, i32, i32
  }
  func.func @transform_3(%arg0: i32) -> (i32, i32) {
    %c0_i32 = arith.constant 0 : i32
    %c0_i32_0 = arith.constant 0 : i32
    %c0_i32_1 = arith.constant 0 : i32
    return %c0_i32, %c0_i32_0 : i32, i32
  }
  func.func @transform_4(%arg0: i32) -> (i32, i32) {
    %c0_i32 = arith.constant 0 : i32
    %c0_i32_0 = arith.constant 0 : i32
    %c0_i32_1 = arith.constant 0 : i32
    return %c0_i32, %c0_i32_0 : i32, i32
  }
  func.func @transform_5(%arg0: i32) -> (i32, i32, i32) {
    %c0_i32 = arith.constant 0 : i32
    %c0_i32_0 = arith.constant 0 : i32
    %c0_i32_1 = arith.constant 0 : i32
    return %arg0, %c0_i32, %c0_i32_0 : i32, i32, i32
  }
}

</mosaic_0001>

<bundles_post_ra>
// kernel: multi_head_self_attention.2
= control target key start
LH: loop header
LB: loop body
LE: loop exit
PB: predicated region body
PF: predicated region fallthrough
CT: control target
= control target key end

     0   :  { %s688_s15 = smov 0   ;;  %s873_s0 = inlined_call_operand.vmem [shape: f32[2,8,128], index: 0, kind: input, shape index: {}]   ;;  %s874_s1 = inlined_call_operand.vmem [shape: f32[128,384], index: 1, kind: input, shape index: {}]   ;;  %s875_s2 = inlined_call_operand.vmem [shape: f32[2,8,128], index: 2, kind: output, shape index: {0}]   ;;  %s876_s3 = inlined_call_operand.vmem [shape: f32[2,8,128], index: 3, kind: output, shape index: {1}]   ;;  %s877_s4 = inlined_call_operand.vmem [shape: f32[2,8,128], index: 4, kind: output, shape index: {2}]  }
   0x1 LB: > { %s522_s16 = sadd.s32 4294967295, %s658_s15   ;;  %p526_p0 = scmp.ge.s32.totalorder %s658_s15, 1  ;;  %s658_s15 = sphi %s688_s15, %s15_s15  }
   0x2   : > { %p166_p1 = scmp.lt.s32.totalorder %s658_s15, 3 }
   0x4   : > { %p167_p2 = pnand %p526_p0, %p166_p1 }
   0x5   : > { %v216_v0 = vld [vmem:[%s874_s1 + $0x8] sm:$0xff] (!%p167_p2)  ;;  %v219_v1 = vld [vmem:[%s874_s1 + $0x20] sm:$0xff] (!%p167_p2)  ;;  %v660_v4 = vmov (!%p167_p2), 0.0|0.0   ;;  %v218_v5 = vld [vmem:[%s874_s1 + $0x18] sm:$0xff] (!%p167_p2)  ;;  %v661_v8 = vmov (!%p167_p2), 0.0   ;;  %vm662_vm0 = vmmov (!%p167_p2), 0  }
   0x6   : > { %170 = sbr.rel (%p167_p2) target bundleno = 254 (0xfe), region = 28  ;;  %v215_v2 = vld [vmem:[%s874_s1] sm:$0xff] (!%p167_p2)  ;;  %v585_v3 = vpack.c.bf16 (!%p167_p2), %v219_v1, %v216_v0  ;;  %617 = vmatprep.subr.bf16.mxu1 (!%p167_p2), %v660_v4  ;;  %v217_v6 = vld [vmem:[%s874_s1 + $0x10] sm:$0xff] (!%p167_p2)  ;;  %v220_v7 = vld [vmem:[%s874_s1 + $0x28] sm:$0xff] (!%p167_p2)  ;;  %327 = vmatprep.mubr.f32.mxu0 (!%p167_p2), %v661_v8  ;;  %p817_p3 = scmp.lt.s32.totalorder (!%p167_p2), %s522_s16, 1 }
   0x7   : > { %v587_v9 = vpack.c.bf16 (!%p167_p2), %v218_v5, %v215_v2  ;;  %v618_v10 = vpack.c.bf16 (!%p167_p2), %v220_v7, %v217_v6  ;;  %v222_v11 = vld [vmem:[%s874_s1 + $0x38] sm:$0xff] (!%p167_p2)  ;;  %v225_v12 = vld [vmem:[%s874_s1 + $0x50] sm:$0xff] (!%p167_p2)  ;;  %582 = vmatprep.mubr.msk.f32.mxu1 (!%p167_p2), %vm662_vm0, %v661_v8  ;;  %v224_v15 = vld [vmem:[%s874_s1 + $0x48] sm:$0xff] (!%p167_p2) }
   0x8   : > { %v221_v13 = vld [vmem:[%s874_s1 + $0x30] sm:$0xff] (!%p167_p2)  ;;  %586 = vmatprep.subr.bf16.mxu0 (!%p167_p2), %v585_v3  ;;  %v589_v14 = vpack.c.bf16 (!%p167_p2), %v225_v12, %v222_v11  ;;  %v223_v16 = vld [vmem:[%s874_s1 + $0x40] sm:$0xff] (!%p167_p2)  ;;  %v226_v17 = vld [vmem:[%s874_s1 + $0x58] sm:$0xff] (!%p167_p2) }
   0x9   : > { %588 = vmatpush1.bf16.msra.mxu0 (!%p167_p2), %v587_v9  ;;  %619 = vmatpush3.bf16.msra.mxu1 (!%p167_p2), %v618_v10  ;;  %v591_v18 = vpack.c.bf16 (!%p167_p2), %v224_v15, %v221_v13  ;;  %v621_v19 = vpack.c.bf16 (!%p167_p2), %v226_v17, %v223_v16  ;;  %v228_v20 = vld [vmem:[%s874_s1 + $0x68] sm:$0xff] (!%p167_p2)  ;;  %v231_v21 = vld [vmem:[%s874_s1 + $0x80] sm:$0xff] (!%p167_p2)  ;;  %v230_v24 = vld [vmem:[%s874_s1 + $0x78] sm:$0xff] (!%p167_p2) }
   0xa   : > { %v227_v22 = vld [vmem:[%s874_s1 + $0x60] sm:$0xff] (!%p167_p2)  ;;  %590 = vmatprep.subr.bf16.mxu0 (!%p167_p2), %v589_v14  ;;  %620 = vmatprep.subr.bf16.mxu1 (!%p167_p2), %v660_v4  ;;  %v593_v23 = vpack.c.bf16 (!%p167_p2), %v231_v21, %v228_v20  ;;  %v229_v25 = vld [vmem:[%s874_s1 + $0x70] sm:$0xff] (!%p167_p2)  ;;  %v232_v26 = vld [vmem:[%s874_s1 + $0x88] sm:$0xff] (!%p167_p2) }
   0xb   : > { %v234_v27 = vld [vmem:[%s874_s1 + $0x98] sm:$0xff] (!%p167_p2)  ;;  %v237_v28 = vld [vmem:[%s874_s1 + $0xb0] sm:$0xff] (!%p167_p2)  ;;  %v595_v29 = vpack.c.bf16 (!%p167_p2), %v230_v24, %v227_v22  ;;  %v624_v30 = vpack.c.bf16 (!%p167_p2), %v232_v26, %v229_v25  ;;  %v236_v33 = vld [vmem:[%s874_s1 + $0xa8] sm:$0xff] (!%p167_p2) }
   0xc   : > { %v233_v31 = vld [vmem:[%s874_s1 + $0x90] sm:$0xff] (!%p167_p2)  ;;  %v597_v32 = vpack.c.bf16 (!%p167_p2), %v237_v28, %v234_v27  ;;  %v235_v34 = vld [vmem:[%s874_s1 + $0xa0] sm:$0xff] (!%p167_p2)  ;;  %v238_v35 = vld [vmem:[%s874_s1 + $0xb8] sm:$0xff] (!%p167_p2) }
   0xd   : > { %592 = vmatpush1.bf16.msra.mxu0 %v591_v18  ;;  %622 = vmatpush3.bf16.msra.mxu1 %v621_v19  ;;  %v240_v36 = vld [vmem:[%s874_s1 + $0xc8] sm:$0xff]  ;;  %v243_v37 = vld [vmem:[%s874_s1 + $0xe0] sm:$0xff]  ;;  %v599_v38 = vpack.c.bf16 %v236_v33, %v233_v31  ;;  %v627_v39 = vpack.c.bf16 %v238_v35, %v235_v34  ;;  %v242_v42 = vld [vmem:[%s874_s1 + $0xd8] sm:$0xff]  ;;  %s880_s16 = smov (!%p817_p3, %s522_s16), 1 }
   0xe   : > { %594 = vmatprep.subr.bf16.mxu0 %v593_v23  ;;  %623 = vmatprep.subr.bf16.mxu1 %v660_v4  ;;  %v239_v40 = vld [vmem:[%s874_s1 + $0xc0] sm:$0xff]  ;;  %v601_v41 = vpack.c.bf16 %v243_v37, %v240_v36  ;;  %v241_v43 = vld [vmem:[%s874_s1 + $0xd0] sm:$0xff]  ;;  %v244_v44 = vld [vmem:[%s874_s1 + $0xe8] sm:$0xff]  ;;  %s527_s18 = sshll.u32 %s880_s16, 3 }
   0xf   : > { %v246_v45 = vld [vmem:[%s874_s1 + $0xf8] sm:$0xff]  ;;  %v249_v46 = vld [vmem:[%s874_s1 + $0x110] sm:$0xff]  ;;  %v603_v47 = vpack.c.bf16 %v242_v42, %v239_v40  ;;  %v630_v48 = vpack.c.bf16 %v244_v44, %v241_v43  ;;  %v248_v51 = vld [vmem:[%s874_s1 + $0x108] sm:$0xff]  ;;  %s201_s21 = scalar_lea.vmem %s873_s0, %s527_s18  ;;  %s205_s16 = scalar_lea.vmem %s875_s2, %s527_s18 }
  0x10   : > { %v245_v49 = vld [vmem:[%s874_s1 + $0xf0] sm:$0xff]  ;;  %v605_v50 = vpack.c.bf16 %v249_v46, %v246_v45  ;;  %v247_v52 = vld [vmem:[%s874_s1 + $0x100] sm:$0xff]  ;;  %v250_v53 = vld [vmem:[%s874_s1 + $0x118] sm:$0xff]  ;;  %s213_s26 = scalar_lea.vmem %s877_s4, %s527_s18  ;;  %s209_s29 = scalar_lea.vmem %s876_s3, %s527_s18 }
  0x11   : > { %596 = vmatpush1.bf16.msra.mxu0 %v595_v29  ;;  %625 = vmatpush3.bf16.msra.mxu1 %v624_v30  ;;  %v252_v54 = vld [vmem:[%s874_s1 + $0x128] sm:$0xff]  ;;  %v255_v55 = vld [vmem:[%s874_s1 + $0x140] sm:$0xff]  ;;  %v607_v56 = vpack.c.bf16 %v248_v51, %v245_v49  ;;  %v633_v57 = vpack.c.bf16 %v250_v53, %v247_v52  ;;  %v254_v60 = vld [vmem:[%s874_s1 + $0x138] sm:$0xff] }
  0x12   : > { %598 = vmatprep.subr.bf16.mxu0 %v597_v32  ;;  %626 = vmatprep.subr.bf16.mxu1 %v660_v4  ;;  %v251_v58 = vld [vmem:[%s874_s1 + $0x120] sm:$0xff]  ;;  %v609_v59 = vpack.c.bf16 %v255_v55, %v252_v54  ;;  %v253_v61 = vld [vmem:[%s874_s1 + $0x130] sm:$0xff]  ;;  %v256_v62 = vld [vmem:[%s874_s1 + $0x148] sm:$0xff] }
  0x13   : > { %v258_v63 = vld [vmem:[%s874_s1 + $0x158] sm:$0xff]  ;;  %v261_v0 = vld [vmem:[%s874_s1 + $0x170] sm:$0xff]  ;;  %v611_v1 = vpack.c.bf16 %v254_v60, %v251_v58  ;;  %v636_v2 = vpack.c.bf16 %v256_v62, %v253_v61  ;;  %v260_v6 = vld [vmem:[%s874_s1 + $0x168] sm:$0xff] }
  0x14   : > { %v257_v3 = vld [vmem:[%s874_s1 + $0x150] sm:$0xff]  ;;  %v613_v5 = vpack.c.bf16 %v261_v0, %v258_v63  ;;  %v259_v7 = vld [vmem:[%s874_s1 + $0x160] sm:$0xff]  ;;  %v262_v8 = vld [vmem:[%s874_s1 + $0x178] sm:$0xff] }
  0x15   : > { %600 = vmatpush1.bf16.msra.mxu0 %v599_v38  ;;  %628 = vmatpush3.bf16.msra.mxu1 %v627_v39  ;;  %v615_v9 = vpack.c.bf16 %v260_v6, %v257_v3  ;;  %v639_v10 = vpack.c.bf16 %v262_v8, %v259_v7  ;;  %v214_v11 = vld [vmem:[%s201_s21] sm:$0xff] }
  0x16   : > { %602 = vmatprep.subr.bf16.mxu0 %v601_v41  ;;  %629 = vmatprep.subr.bf16.mxu1 %v660_v4 }
  0x19   : > { %604 = vmatpush1.bf16.msra.mxu0 %v603_v47  ;;  %631 = vmatpush3.bf16.msra.mxu1 %v630_v48 }
  0x1a   : > { %606 = vmatprep.subr.bf16.mxu0 %v605_v50  ;;  %632 = vmatprep.subr.bf16.mxu1 %v660_v4 }
  0x1d   : > { %608 = vmatpush1.bf16.msra.mxu0 %v607_v56  ;;  %634 = vmatpush3.bf16.msra.mxu1 %v633_v57 }
  0x1e   : > { %610 = vmatprep.subr.bf16.mxu0 %v609_v59  ;;  %635 = vmatprep.subr.bf16.mxu1 %v660_v4 }
  0x21   : > { %612 = vmatpush1.bf16.msra.mxu0 %v611_v1  ;;  %637 = vmatpush3.bf16.msra.mxu1 %v636_v2 }
  0x22   : > { %614 = vmatprep.subr.bf16.mxu0 %v613_v5  ;;  %638 = vmatprep.subr.bf16.mxu1 %v660_v4 }
  0x25   : > { %616 = vmatpush1.bf16.msra.mxu0 %v615_v9  ;;  %640 = vmatpush3.bf16.msra.mxu1 %v639_v10 }
  0x28   : > { %328 = vmatmul.mubr.f32.vlgmr.msra.gmra.mrb[0].mxu0 %v214_v11  ;;  %583 = vmatmul.mubr.f32.vlgmr.msra.gmra.mrb[0].mxu1 %v214_v11 }
  0xfb   : > { %v329_v4 = vpop.f32.mrb[0].mxu0  ;;  %v400_v12 = vpop.f32.mrb[0].mxu1 }
  0xfc   : > { %404 = vst [vmem:[%s205_s16] sm:$0xff] %v329_v4  ;;  %406 = vst [vmem:[%s213_s26] sm:$0xff] %v400_v12  ;;  %v331_v13 = vpop.f32.mrb[1].mxu0  ;;  %v584_v14 = vpop.f32.mrb[1].mxu1 }
  0xfd   : > { %405 = vst [vmem:[%s209_s29] sm:$0xff] %v331_v13 }
  0xfe PF: > { %s15_s15 = sadd.s32 1, %s658_s15  }
  0xff   : > { %p12_p4 = scmp.ge.s32.totalorder %s15_s15, 4  }
 0x101   :  { %14 = sbr.rel (!%p12_p4) target bundleno = 1 (0x1), region = 82 }

// kernel: multi_head_self_attention.3
= control target key start
LH: loop header
LB: loop body
LE: loop exit
PB: predicated region body
PF: predicated region fallthrough
CT: control target
= control target key end

     0   :  { %10 = vsyncpa [#allocation3], 0  ;;  %s1937_s0 = inlined_call_operand.vmem [shape: f32[2,4,8,32], index: 0, kind: input, shape index: {}]   ;;  %s1938_s1 = inlined_call_operand.vmem [shape: f32[2,4,8,32], index: 1, kind: input, shape index: {}]   ;;  %s1939_s2 = inlined_call_operand.vmem [shape: f32[2,4,8,32], index: 2, kind: input, shape index: {}]   ;;  %s1940_s3 = inlined_call_operand.vmem [shape: f32[128,128], index: 3, kind: input, shape index: {}]   ;;  %s1941_s4 = inlined_call_operand.vmem [shape: f32[1,128], index: 4, kind: input, shape index: {}]   ;;  %s1942_s5 = inlined_call_operand.hbm [shape: f32[2,8,128], index: 5, kind: output, shape index: {}]  }
   0x1   :  { %12 = vsyncpa [#allocation3 + $0x1], 0  ;;  %s1690_s18 = smov 0   ;;  %s1692_s19 = smov 0  }
   0x2   :  { %s1694_s20 = smov 0   ;;  %s1696_s21 = smov 0  }
   0x3 LB: > { %s1711_s22 = sadd.s32 4294967295, %s1654_s21   ;;  %s1346_s23 = sadd.s32 4294967294, %s1654_s21   ;;  %s1654_s21 = sphi %s1696_s21, %s1948_s21   ;;  %s1650_s20 = sphi %s1694_s20, %s1947_s20   ;;  %s1646_s19 = sphi %s1692_s19, %s1946_s19   ;;  %s1642_s18 = sphi %s1690_s18, %s1945_s18  }
   0x4   : > { %s1715_s24 = sadd.s32 1, %s1654_s21   ;;  %s145_s25 = sadd.s32 1, %s1650_s20 }
   0x5   : > { %s142_s26 = ssub.s32 %s1654_s21, %s1715_s24  ;;  %p155_p0 = scmp.ne.s32.totalorder %s1650_s20, %s1646_s19 }
   0x6   : > { %p143_p1 = scmp.eq.s32.totalorder %s142_s26, 0  ;;  %p156_p2 = scmp.eq.s32.totalorder %s1711_s22, 1 }
   0x7   : > { %p161_p3 = scmp.ne.s32.totalorder %s1646_s19, %s1642_s18  ;;  %p162_p4 = scmp.eq.s32.totalorder %s1346_s23, 1 }
   0x8   : > { %s1726_s27 = scalar_select %p143_p1, %s1650_s20, %s145_s25  }
   0x9   : > { %p1728_p5 = por %p156_p2, %p155_p0  ;;  %p1732_p6 = por %p162_p4, %p161_p3 }
   0xa   : > { %p1349_p7 = scmp.ge.s32.totalorder %s1654_s21, 1  ;;  %p210_p8 = scmp.lt.s32.totalorder %s1654_s21, 3 }
   0xc   : > { %p211_p9 = pnand %p1349_p7, %p210_p8 }
   0xd   : > { %p248_p10 = scmp.lt.s32.totalorder (!%p211_p9), %s1711_s22, 1  ;;  %v1656_v0 = vmov (!%p211_p9), 0.0   ;;  %vm1657_vm0 = vmmov (!%p211_p9), 0   ;;  %vm266_vm1 = vcmask (!%p211_p9), 261120   ;;  %vm344_vm2 = vcmask (!%p211_p9), 64512   ;;  %v600_v24 = vld [vmem:[%s1940_s3 + $0x20] sm:$0xff] (!%p211_p9) }
   0xe   : > { %214 = sbr.rel (%p211_p9) target bundleno = 2279 (0x8e7), region = 40  ;;  %1426 = vmatprep.subr.mxu0 (!%p211_p9), %v1656_v0  ;;  %1428 = vmatprep.mubr.msk.f32.mxu0 (!%p211_p9), %vm1657_vm0, %v1656_v0  ;;  %v601_v25 = vld [vmem:[%s1940_s3 + $0x28] sm:$0xff] (!%p211_p9)  ;;  %v1658_v26 = vmov (!%p211_p9), 0.0|0.0   ;;  %v602_v28 = vld [vmem:[%s1940_s3 + $0x30] sm:$0xff] (!%p211_p9)  ;;  %v603_v29 = vld [vmem:[%s1940_s3 + $0x38] sm:$0xff] (!%p211_p9)  ;;  %s1384_s7 = sshll.u32 (!%p211_p9), %s1711_s22, 7 }
   0xf   : > { %1436 = vmatprep.subr.mxu1 (!%p211_p9), %v1656_v0  ;;  %1438 = vmatprep.mubr.msk.f32.mxu1 (!%p211_p9), %vm1657_vm0, %v1656_v0  ;;  %v1511_v27 = vpack.c.bf16 (!%p211_p9), %v601_v25, %v600_v24  ;;  %v1514_v30 = vpack.c.bf16 (!%p211_p9), %v603_v29, %v602_v28  ;;  %v429_v36 = vld [vmem:[%s1940_s3] sm:$0xff] (!%p211_p9)  ;;  %v430_v37 = vld [vmem:[%s1940_s3 + $0x8] sm:$0xff] (!%p211_p9)  ;;  %v431_v41 = vld [vmem:[%s1940_s3 + $0x10] sm:$0xff] (!%p211_p9) }
  0x10   : > { %v1517_v39 = vpack.c.bf16 (!%p211_p9), %v430_v37, %v429_v36  ;;  %v432_v42 = vld [vmem:[%s1940_s3 + $0x18] sm:$0xff] (!%p211_p9)  ;;  %v1163_v25 = vld [vmem:[%s1940_s3 + $0x68] sm:$0xff] (!%p211_p9) }
  0x11   : > { %v1520_v43 = vpack.c.bf16 (!%p211_p9), %v432_v42, %v431_v41  ;;  %v1165_v29 = vld [vmem:[%s1940_s3 + $0x78] sm:$0xff] (!%p211_p9) }
  0x15   : > { %s249_s30 = scalar_select %p248_p10, %s1711_s22, 1 }
  0x16   : > { %s1659_s22 = smov [#allocation2]  }
  0x17   : > { %s1746_s6 = sshll.u32 %s249_s30, 5  ;;  %s1596_s16 = sshll.u32 %s1659_s22, 4  ;;  %s1597_s16 = int_to_ptr.vmem [resolvable:$false] %s1596_s16 }
  0x18   : > { %s1752_s9 = scalar_lea.vmem %s1938_s1, %s1746_s6  ;;  %s1758_s12 = scalar_lea.vmem %s1937_s0, %s1746_s6 }
  0x19   : > { %v264_v1 = vld [vmem:[%s1752_s9] sm:$0xff]  ;;  %v1361_v2 = vld [vmem:[%s1752_s9 + $0x8] sm:$0xff]  ;;  %s1781_s15 = scalar_lea.vmem %s1939_s2, %s1746_s6  ;;  %v1369_v46 = vld [vmem:[%s1752_s9 + $0x10] sm:$0xff]  ;;  %s1598_s17 = scalar_lea.vmem %s1597_s16, 256 }
  0x1a   : > { %1427 = vmatpush3.xpose.msk.msra.mxu0 %vm266_vm1, %v264_v1  ;;  %v263_v3 = vld [vmem:[%s1758_s12] sm:$0xff]  ;;  %1437 = vmatpush3.xpose.msk.msra.mxu1 %vm266_vm1, %v1361_v2  ;;  %v1360_v4 = vld [vmem:[%s1758_s12 + $0x8] sm:$0xff]  ;;  %v1368_v49 = vld [vmem:[%s1758_s12 + $0x10] sm:$0xff] }
  0x1b   : > { %1431 = vmatprep.subr.mxu0 %v1656_v0  ;;  %v265_v23 = vld [vmem:[%s1781_s15] sm:$0xff]  ;;  %1510 = vmatprep.subr.bf16.mxu1 %v1658_v26  ;;  %v1362_v35 = vld [vmem:[%s1781_s15 + $0x8] sm:$0xff]  ;;  %v1370_v1 = vld [vmem:[%s1781_s15 + $0x10] sm:$0xff] }
  0x1c   : > { %v917_v2 = vld [vmem:[%s1940_s3 + $0x40] sm:$0xff]  ;;  %v1377_v24 = vld [vmem:[%s1781_s15 + $0x18] sm:$0xff]  ;;  %s245_s15 = sand.u32 1, %s1646_s19  }
  0x1d   : > { %1429 = vmatmul.mubr.msk.f32.vlgmr.msra.gmra.mrb[0].mxu0 %vm266_vm1, %v263_v3  ;;  %1439 = vmatmul.mubr.msk.f32.vlgmr.msra.gmra.mrb[0].mxu1 %vm266_vm1, %v1360_v4  ;;  %v918_v3 = vld [vmem:[%s1940_s3 + $0x48] sm:$0xff]  ;;  %v919_v4 = vld [vmem:[%s1940_s3 + $0x50] sm:$0xff]  ;;  %s1350_s26 = sshll.u32 %s245_s15, 3  ;;  %s1250_s13 = scalar_lea.sflag [#allocation3], %s245_s15 }
  0x1e   : > { %1433 = vmatprep.mubr.msk.f32.mxu0 %vm1657_vm0, %v1656_v0  ;;  %1454 = vmatprep.mubr.msk.f32.mxu1 %vm1657_vm0, %v1656_v0  ;;  %s247_s8 = scalar_lea.vmem [#allocation2], %s1350_s26 }
  0x1f   : > { %1432 = vmatpush3.msra.mxu0 %v265_v23  ;;  %1512 = vmatpush3.bf16.msra.mxu1 %v1511_v27  ;;  %v1164_v27 = vld [vmem:[%s1940_s3 + $0x70] sm:$0xff]  ;;  %s1263_s10 = sshll.u32 %s247_s8, 4  ;;  %s1897_s10 = int_to_ptr.vmem [resolvable:$true] %s1263_s10 }
  0x20   : > { %1441 = vmatprep.subr.mxu0 %v1656_v0  ;;  %1513 = vmatprep.subr.bf16.mxu1 %v1658_v26  ;;  %s1592_s14 = scalar_lea.vmem %s1897_s10, 128  ;;  %p1599_p0 = scmp.lt.s32.totalorder %s1897_s10, %s1597_s16 }
  0x21   : > { %p1593_p11 = scmp.ne.s32.totalorder %s1897_s10, %s1592_s14  ;;  %p1600_p1 = scmp.lt.s32.totalorder %s1598_s17, %s1592_s14 }
  0x23   : > { %1515 = vmatpush3.bf16.msra.mxu1 %v1514_v30  ;;  %v1532_v30 = vpack.c.bf16 %v1165_v29, %v1164_v27  ;;  %p1594_p12 = pnand %p1593_p11, %p1728_p5  ;;  %p1601_p2 = por %p1600_p1, %p1599_p0 }
  0x24   : > { %1468 = vmatprep.subr.mxu1 %v1656_v0 }
  0x25   : > { %p1595_p13 = pneg %p1594_p12 }
  0x27   : > { %p1602_p3 = pnand %p1601_p2, %p1595_p13 }
  0xf0   : > { %v339_v5 = vpop.f32.mrb[0].mxu0  ;;  %v511_v6 = vpop.f32.mrb[0].mxu1 }
  0xf1   : > { %v343_v7 = vmul.f32 0.17677669, %v339_v5  ;;  %v1430_v8 = vpop.f32.mrb[1].mxu0  ;;  %v515_v9 = vmul.f32 0.17677669, %v511_v6  ;;  %v1440_v10 = vpop.f32.mrb[1].mxu1  ;;  %v1523_v5 = vpack.c.bf16 %v918_v3, %v917_v2 }
  0xf2   : > { %v920_v6 = vld [vmem:[%s1940_s3 + $0x58] sm:$0xff] }
  0xf3   : > { %v345_v11 = vsel %vm344_vm2, %v343_v7, -inf  ;;  %v516_v12 = vsel %vm344_vm2, %v515_v9, -inf }
  0xf4   : > { %346 = vmax.xlane.f32.xlu0 %v345_v11  ;;  %v1376_v11 = vld [vmem:[%s1752_s9 + $0x18] sm:$0xff] }
  0xf8   : > { %517 = vmax.xlane.f32.xlu0 %v516_v12  ;;  %v1375_v12 = vld [vmem:[%s1758_s12 + $0x18] sm:$0xff]  ;;  %s1895_s12 = scalar_lea.hbm %s1942_s5, %s1384_s7 }
 0x181   : > { %v347_v13 = vpop.xlane.xlu0 %346 }
 0x182   : > { %v348_v14 = vsub.f32 %v343_v7, %v347_v13  ;;  %v1526_v7 = vpack.c.bf16 %v920_v6, %v919_v4 }
 0x184   : > { %v349_v15 = vmul.f32 1.442695, %v348_v14 }
 0x185   : > { %v518_v16 = vpop.xlane.xlu0 %517 }
 0x186   : > { %1576 = vpow2.f32 %v349_v15  ;;  %v519_v17 = vsub.f32 %v515_v9, %v518_v16 }
 0x188   : > { %v520_v18 = vmul.f32 1.442695, %v519_v17 }
 0x18a   : > { %1578 = vpow2.f32 %v520_v18 }
 0x190   : > { %v1577_v19 = vpop.eup %1576 }
 0x191   : > { %v351_v20 = vsel %vm344_vm2, %v1577_v19, 0.0 }
 0x192   : > { %352 = vadd.xlane.f32.xlu1 %v351_v20 }
 0x194   : > { %v1579_v21 = vpop.eup %1578 }
 0x195   : > { %v522_v22 = vsel %vm344_vm2, %v1579_v21, 0.0 }
 0x196   : > { %523 = vadd.xlane.f32.xlu1 %v522_v22 }
 0x21f   : > { %v353_v31 = vpop.xlane.xlu1 %352 }
 0x220   : > { %1580 = vrcp.f32 %v353_v31 }
 0x223   : > { %v524_v32 = vpop.xlane.xlu1 %523 }
 0x224   : > { %1582 = vrcp.f32 %v524_v32 }
 0x22a   : > { %v1581_v33 = vpop.eup %1580 }
 0x22b   : > { %v355_v34 = vmul.f32 %v1581_v33, %v1577_v19 }
 0x22d   : > { %1434 = vmatmul.mubr.msk.f32.vlgmr.msra.gmra.mrb[2].mxu0 %vm344_vm2, %v355_v34 }
 0x22e   : > { %v1583_v38 = vpop.eup %1582  ;;  %1442 = vmatpush3.msra.mxu0 %v1362_v35  ;;  %1443 = vmatprep.mubr.msk.f32.mxu0 %vm1657_vm0, %v1656_v0 }
 0x22f   : > { %v526_v40 = vmul.f32 %v1583_v38, %v1579_v21  ;;  %1516 = vmatprep.subr.bf16.mxu0 %v1658_v26 }
 0x231   : > { %1444 = vmatmul.mubr.msk.f32.vlgmr.msra.gmra.mrb[4].mxu0 %vm344_vm2, %v526_v40 }
 0x232   : > { %1518 = vmatpush3.bf16.msra.mxu0 %v1517_v39  ;;  %1465 = vmatprep.mubr.msk.f32.mxu0 %vm1657_vm0, %v1656_v0  ;;  %v1382_v39 = vld [vmem:[%s1941_s4] ss:$0 sm:$0xff] }
 0x233   : > { %1519 = vmatprep.subr.bf16.mxu0 %v1658_v26 }
 0x236   : > { %1521 = vmatpush3.bf16.msra.mxu0 %v1520_v43 }
 0x237   : > { %1473 = vmatprep.subr.mxu0 %v1656_v0 }
 0x300   : > { %v425_v44 = vpop.f32.mrb[2].mxu0 }
 0x301   : > { %v1435_v45 = vpop.f32.mrb[3].mxu0  ;;  %1466 = vmatmul.mubr.msk.f32.vlgmr.msra.gmra.mrb[6].mxu0 %vm266_vm1, %v425_v44 }
 0x302   : > { %1475 = vmatprep.mubr.msk.f32.mxu0 %vm1657_vm0, %v1656_v0  ;;  %1474 = vmatpush3.msra.mxu0 %v1370_v1 }
 0x303   : > { %1489 = vmatprep.subr.mxu0 %v1656_v0 }
 0x304   : > { %v596_v47 = vpop.f32.mrb[4].mxu0 }
 0x305   : > { %v1445_v48 = vpop.f32.mrb[5].mxu0  ;;  %1455 = vmatmul.mubr.msk.f32.vlgmr.msra.gmra.mrb[2].mxu1 %vm266_vm1, %v596_v47 }
 0x306   : > { %1469 = vmatpush3.xpose.msk.msra.mxu1 %vm266_vm1, %v1369_v46  ;;  %1470 = vmatprep.mubr.msk.f32.mxu1 %vm1657_vm0, %v1656_v0 }
 0x307   : > { %1522 = vmatprep.subr.bf16.mxu1 %v1658_v26 }
 0x309   : > { %1471 = vmatmul.mubr.msk.f32.vlgmr.msra.gmra.mrb[4].mxu1 %vm266_vm1, %v1368_v49 }
 0x30a   : > { %1486 = vmatprep.mubr.msk.f32.mxu1 %vm1657_vm0, %v1656_v0  ;;  %1524 = vmatpush3.bf16.msra.mxu1 %v1523_v5 }
 0x30b   : > { %1525 = vmatprep.subr.bf16.mxu1 %v1658_v26 }
 0x30e   : > { %1527 = vmatpush3.bf16.msra.mxu1 %v1526_v7 }
 0x30f   : > { %1528 = vmatprep.subr.bf16.mxu1 %v1658_v26 }
 0x3d4   : > { %v746_v50 = vpop.f32.mrb[6].mxu0 }
 0x3d5   : > { %v1467_v51 = vpop.f32.mrb[7].mxu0 }
 0x3d8   : > { %v673_v52 = vpop.f32.mrb[2].mxu1 }
 0x3d9   : > { %v1835_v53 = vadd.f32 %v746_v50, %v673_v52  ;;  %v1456_v54 = vpop.f32.mrb[3].mxu1 }
 0x3dc   : > { %v828_v55 = vpop.f32.mrb[4].mxu1 }
 0x3dd   : > { %v832_v56 = vmul.f32 0.17677669, %v828_v55  ;;  %v1472_v57 = vpop.f32.mrb[5].mxu1 }
 0x3df   : > { %v833_v58 = vsel %vm344_vm2, %v832_v56, -inf }
 0x3e0   : > { %834 = vmax.xlane.f32.xlu0 %v833_v58 }
 0x46d   : > { %v835_v59 = vpop.xlane.xlu0 %834 }
 0x46e   : > { %v836_v60 = vsub.f32 %v832_v56, %v835_v59 }
 0x470   : > { %v837_v61 = vmul.f32 1.442695, %v836_v60 }
 0x472   : > { %1584 = vpow2.f32 %v837_v61 }
 0x47c   : > { %v1585_v62 = vpop.eup %1584 }
 0x47d   : > { %v839_v63 = vsel %vm344_vm2, %v1585_v62, 0.0 }
 0x47e   : > { %840 = vadd.xlane.f32.xlu1 %v839_v63 }
 0x50b   : > { %v841_v8 = vpop.xlane.xlu1 %840 }
 0x50c   : > { %1586 = vrcp.f32 %v841_v8 }
 0x516   : > { %v1587_v9 = vpop.eup %1586 }
 0x517   : > { %v843_v10 = vmul.f32 %v1587_v9, %v1585_v62 }
 0x519   : > { %1476 = vmatmul.mubr.msk.f32.vlgmr.msra.gmra.mrb[8].mxu0 %vm344_vm2, %v843_v10 }
 0x51a   : > { %1490 = vmatpush3.xpose.msk.msra.mxu0 %vm266_vm1, %v1376_v11  ;;  %1491 = vmatprep.mubr.msk.f32.mxu0 %vm1657_vm0, %v1656_v0 }
 0x51b   : > { %1494 = vmatprep.subr.mxu0 %v1656_v0 }
 0x51d   : > { %1492 = vmatmul.mubr.msk.f32.vlgmr.msra.gmra.mrb[10].mxu0 %vm266_vm1, %v1375_v12 }
 0x51e   : > { %1496 = vmatprep.mubr.msk.f32.mxu0 %vm1657_vm0, %v1656_v0  ;;  %1495 = vmatpush3.msra.mxu0 %v1377_v24 }
 0x5ec   : > { %v913_v13 = vpop.f32.mrb[8].mxu0 }
 0x5ed   : > { %v1477_v14 = vpop.f32.mrb[9].mxu0  ;;  %1487 = vmatmul.mubr.msk.f32.vlgmr.msra.gmra.mrb[6].mxu1 %vm266_vm1, %v913_v13 }
 0x5ee   : > { %1507 = vmatprep.mubr.msk.f32.mxu1 %vm1657_vm0, %v1656_v0  ;;  %v1162_v0 = vld [vmem:[%s1940_s3 + $0x60] sm:$0xff] }
 0x5ef   : > { %v1529_v28 = vpack.c.bf16 %v1163_v25, %v1162_v0 }
 0x5f0   : > { %v1073_v15 = vpop.f32.mrb[10].mxu0 }
 0x5f1   : > { %v1077_v16 = vmul.f32 0.17677669, %v1073_v15  ;;  %v1493_v17 = vpop.f32.mrb[11].mxu0  ;;  %1530 = vmatpush3.bf16.msra.mxu1 %v1529_v28 }
 0x5f2   : > { %1531 = vmatprep.subr.bf16.mxu1 %v1658_v26 }
 0x5f3   : > { %v1078_v18 = vsel %vm344_vm2, %v1077_v16, -inf }
 0x5f4   : > { %1079 = vmax.xlane.f32.xlu0 %v1078_v18 }
 0x5f5   : > { %1533 = vmatpush3.bf16.msra.mxu1 %v1532_v30 }
 0x681   : > { %v1080_v19 = vpop.xlane.xlu0 %1079 }
 0x682   : > { %v1081_v20 = vsub.f32 %v1077_v16, %v1080_v19 }
 0x684   : > { %v1082_v21 = vmul.f32 1.442695, %v1081_v20 }
 0x686   : > { %1588 = vpow2.f32 %v1082_v21 }
 0x690   : > { %v1589_v22 = vpop.eup %1588 }
 0x691   : > { %v1084_v23 = vsel %vm344_vm2, %v1589_v22, 0.0 }
 0x692   : > { %1085 = vadd.xlane.f32.xlu1 %v1084_v23 }
 0x6c0   : > { %v990_v31 = vpop.f32.mrb[6].mxu1 }
 0x6c1   : > { %v994_v32 = vadd.f32 %v990_v31, %v1835_v53  ;;  %v1488_v33 = vpop.f32.mrb[7].mxu1 }
 0x71f   : > { %v1086_v34 = vpop.xlane.xlu1 %1085 }
 0x720   : > { %1590 = vrcp.f32 %v1086_v34 }
 0x72a   : > { %v1591_v35 = vpop.eup %1590 }
 0x72b   : > { %v1088_v36 = vmul.f32 %v1591_v35, %v1589_v22 }
 0x72d   : > { %1497 = vmatmul.mubr.msk.f32.vlgmr.msra.gmra.mrb[12].mxu0 %vm344_vm2, %v1088_v36 }
 0x800   : > { %v1158_v37 = vpop.f32.mrb[12].mxu0 }
 0x801   : > { %v1498_v38 = vpop.f32.mrb[13].mxu0  ;;  %1508 = vmatmul.mubr.msk.f32.vlgmr.msra.gmra.mrb[8].mxu1 %vm266_vm1, %v1158_v37 }
 0x8d4   : > { %v1235_v26 = vpop.f32.mrb[8].mxu1 }
 0x8d5   : > { %v1239_v40 = vadd.f32 %v1235_v26, %v994_v32  ;;  %v1509_v41 = vpop.f32.mrb[9].mxu1 }
 0x8d7   : > { %v1247_v42 = vadd.f32 %v1382_v39, %v1239_v40 }
 0x8d9   : > { %1248 = vst [vmem:[%s247_s8] sm:$0xff] %v1247_v42 }
 0x8da   : > { %1605 = shalt.err (!%p1602_p3)
}
 0x8db   : > { %s1606_s23 = scalar_lea.hbm %s1895_s12, 128  ;;  %s1610_s26 = scalar_lea.hbm %s1942_s5, 256 }
 0x8dc   : > { %p1607_p4 = scmp.ne.s32.totalorder %s1895_s12, %s1606_s23  ;;  %p1611_p9 = scmp.lt.u32.totalorder %s1895_s12, %s1942_s5 }
 0x8dd   : > { %p1612_p10 = scmp.lt.u32.totalorder %s1610_s26, %s1606_s23  ;;  %p1614_p12 = scmp.lt.u32.totalorder %s1606_s23, %s1895_s12 }
 0x8de   : > { %p1608_p7 = pnand %p1607_p4, %p1728_p5 }
 0x8df   : > { %p1613_p11 = por %p1612_p10, %p1611_p9 }
 0x8e0   : > { %p1609_p8 = pneg %p1608_p7 }
 0x8e1   : > { %p1615_p13 = por %p1614_p12, %p1613_p11 }
 0x8e3   : > { %p1616_p0 = pnand %p1615_p13, %p1609_p8 }
 0x8e5   : > { %1619 = shalt.err (!%p1616_p0)
}
 0x8e6   : > { %1534 = dma.vmem_to_hbm [thread:$0]  (%p1728_p5), %s1897_s10, 128, %s1895_s12, %s1250_s13  }
 0x8e7 PF: > { %p1540_p1 = scmp.ge.s32.totalorder %s1654_s21, 2  ;;  %s1275_s7 = sand.u32 1, %s1642_s18  }
 0x8e8   : > { %s1276_s8 = scalar_lea.sflag [#allocation3], %s1275_s7 }
 0x8e9   : > { %p1537_p2 = pnand %p1540_p1, %p1732_p6 }
 0x8eb   : > { %1637 = dma.done.wait (!%p1537_p2), %s1276_s8, 128  }
 0x8ec   : > { %1639 = vsyncadd (!%p1537_p2), %s1276_s8, 4294967168  ;;  %p15_p3 = scmp.ge.s32.totalorder %s1715_s24, 4   ;;  %s1945_s18 = smov %s1646_s19 }
 0x8ed   : > { %s1946_s19 = smov %s1650_s20  ;;  %s1947_s20 = smov %s1726_s27 }
 0x8ee   : > { %s1948_s21 = smov %s1715_s24  ;;  %17 = sbr.rel (!%p15_p3) target bundleno = 3 (0x3), region = 90 }
 0x8f5   :  { %1281 = vsyncpa [#allocation3], 1 }
 0x8f6   :  { %1283 = vsyncpa [#allocation3 + $0x1], 1 }

</bundles_post_ra>
